<compile_context>
chip_gen: v7x
topology: tpu7x:2x2x1
jax: 0.10.0
libtpu: 0.0.40
codegen_flags: <defaults>
</compile_context>

<pallas_src>
import functools

import jax
import jax.numpy as jnp
from jax.experimental import pallas as pl
from jax.experimental.pallas import tpu as pltpu


LANE = 128
SUBLANE = 8


def _round_up(x, m):
    return ((x + m - 1) // m) * m


def ae_kernel(x_ref,
              w1_ref, b1_ref, w2_ref, b2_ref,       # encoder params
              w3_ref, b3_ref, w4_ref, b4_ref,       # decoder params
              recon_ref, z_ref):
    x = x_ref[...]

    # ---- encoder: Linear -> ReLU -> (Dropout=identity) -> Linear ----
    h1 = jnp.dot(x, w1_ref[...], preferred_element_type=jnp.float32) + b1_ref[...]
    h1 = jnp.maximum(h1, 0.0)
    z = jnp.dot(h1.astype(w2_ref.dtype), w2_ref[...],
                preferred_element_type=jnp.float32) + b2_ref[...]
    z_ref[...] = z.astype(z_ref.dtype)

    # ---- decoder: Linear -> ReLU -> (Dropout=identity) -> Linear -> Tanh ----
    h2 = jnp.dot(z.astype(w3_ref.dtype), w3_ref[...],
                 preferred_element_type=jnp.float32) + b3_ref[...]
    h2 = jnp.maximum(h2, 0.0)
    recon = jnp.dot(h2.astype(w4_ref.dtype), w4_ref[...],
                    preferred_element_type=jnp.float32) + b4_ref[...]
    recon_ref[...] = jnp.tanh(recon).astype(recon_ref.dtype)


@functools.partial(jax.jit, static_argnames=("block_b", "compute_dtype"))
def ae_forward(x, params, *, block_b=512, compute_dtype=jnp.bfloat16):
    """x: [B, input_dim] float32.

    Returns (reconstruction [B, input_dim], z [B, 2*features]) in x.dtype.
    Matmul operands are cast to `compute_dtype` (bf16 by default, f32 accumulation);
    all elementwise math stays f32.
    """
    (w1, b1, w2, b2, w3, b3, w4, b4) = params
    B, input_dim = x.shape
    mid_dim = w1.shape[1]
    z_dim = w2.shape[1]

    # ---- lane-dense padding of every feature dim to a multiple of 128 ----
    in_p = _round_up(input_dim, LANE)
    mid_p = _round_up(mid_dim, LANE)
    z_p = _round_up(z_dim, LANE)

    def pad2(a, rows, cols):
        return jnp.pad(a, ((0, rows - a.shape[0]), (0, cols - a.shape[1])))

    # Weights padded with zeros (extra rows/cols contribute nothing); weights go to
    # the MXU in compute_dtype, biases stay f32 for the f32 vector path.
    w1p = pad2(w1, in_p, mid_p).astype(compute_dtype)
    w2p = pad2(w2, mid_p, z_p).astype(compute_dtype)
    w3p = pad2(w3, z_p, mid_p).astype(compute_dtype)
    w4p = pad2(w4, mid_p, in_p).astype(compute_dtype)
    b1p = pad2(b1, 1, mid_p).astype(jnp.float32)
    b2p = pad2(b2, 1, z_p).astype(jnp.float32)
    b3p = pad2(b3, 1, mid_p).astype(jnp.float32)
    b4p = pad2(b4, 1, in_p).astype(jnp.float32)

    # ---- batch tiling: big tiles, and >=2 grid steps when possible (v7x 2 TCs) ----
    bb = min(_round_up(block_b, SUBLANE), _round_up(B, SUBLANE))
    if _round_up(B, bb) // bb < 2 and bb > SUBLANE:
        bb = _round_up((bb + 1) // 2, SUBLANE)
    B_p = _round_up(B, bb)
    xp = pad2(x, B_p, in_p).astype(compute_dtype)

    grid = (B_p // bb,)

    def batch_spec(dim):
        return pl.BlockSpec((bb, dim), lambda i: (i, 0))

    def full_spec(shape):
        return pl.BlockSpec(shape, lambda i: (0, 0))

    in_specs = [
        batch_spec(in_p),                            # x (tiled over batch)
        full_spec(w1p.shape), full_spec(b1p.shape),  # encoder L1
        full_spec(w2p.shape), full_spec(b2p.shape),  # encoder L2
        full_spec(w3p.shape), full_spec(b3p.shape),  # decoder L1
        full_spec(w4p.shape), full_spec(b4p.shape),  # decoder L2
    ]
    out_specs = [
        batch_spec(in_p),                            # reconstruction (lane-dense)
        batch_spec(z_p),                             # z (lane-dense)
    ]
    out_shape = [
        jax.ShapeDtypeStruct((B_p, in_p), x.dtype),
        jax.ShapeDtypeStruct((B_p, z_p), x.dtype),
    ]

    # ---- cost estimate for XLA scheduling ----
    cd_bytes = jnp.dtype(compute_dtype).itemsize
    flops = 2 * B_p * (in_p * mid_p + mid_p * z_p + z_p * mid_p + mid_p * in_p)
    weight_bytes = (w1p.size + w2p.size + w3p.size + w4p.size) * cd_bytes + \
                   (b1p.size + b2p.size + b3p.size + b4p.size) * 4
    bytes_accessed = (B_p * in_p * cd_bytes            # x
                      + weight_bytes                   # params
                      + B_p * (in_p + z_p) * 4)        # outputs
    cost = pl.CostEstimate(flops=flops,
                           transcendentals=B_p * in_p,  # tanh
                           bytes_accessed=bytes_accessed)

    # ---- VMEM budget: only raise the scoped limit if the tile footprint needs it ----
    act_bytes = bb * (in_p * cd_bytes + (in_p + z_p) * 4)          # x tile + outputs
    inter_bytes = bb * (2 * mid_p + z_p + in_p) * 4                # f32 intermediates
    vmem_est = 2 * (weight_bytes + act_bytes) + inter_bytes        # double-buffering
    vmem_limit = None
    if vmem_est > 30 * 1024 * 1024:
        vmem_limit = min(int(vmem_est * 1.4), 64 * 1024 * 1024)    # v7x physical cap

    compiler_params = pltpu.CompilerParams(
        dimension_semantics=("parallel",),
        vmem_limit_bytes=vmem_limit,
    )

    recon_p, z_pad = pl.pallas_call(
        ae_kernel,
        grid=grid,
        in_specs=in_specs,
        out_specs=out_specs,
        out_shape=out_shape,
        compiler_params=compiler_params,
        cost_estimate=cost,
    )(xp, w1p, b1p, w2p, b2p, w3p, b3p, w4p, b4p)

    # Slice back to the caller's logical shapes.
    return recon_p[:B, :input_dim], z_pad[:B, :z_dim]


def init_params(key, input_dim, mid_dim, features):
    """Deterministic synthetic params. Weights stored [in, out]; biases [1, out]."""
    ks = jax.random.split(key, 8)

    def lin(kw, kb, fan_in, fan_out):
        bound = 1.0 / jnp.sqrt(fan_in)
        w = jax.random.uniform(kw, (fan_in, fan_out), jnp.float32, -bound, bound)
        b = jax.random.uniform(kb, (1, fan_out), jnp.float32, -bound, bound)
        return w, b

    # encoder: input_dim -> mid_dim -> features*2
    w1, b1 = lin(ks[0], ks[1], input_dim, mid_dim)
    w2, b2 = lin(ks[2], ks[3], mid_dim, features * 2)
    # decoder: features*2 -> mid_dim -> input_dim   (see NOTE at top re: in_features)
    w3, b3 = lin(ks[4], ks[5], features * 2, mid_dim)
    w4, b4 = lin(ks[6], ks[7], mid_dim, input_dim)
    return (w1, b1, w2, b2, w3, b3, w4, b4)


def ae_reference(x, params):
    """Plain-JAX f32 reference of the same forward (dropout in eval mode)."""
    (w1, b1, w2, b2, w3, b3, w4, b4) = params
    h1 = jnp.maximum(x @ w1 + b1, 0.0)
    z = h1 @ w2 + b2
    h2 = jnp.maximum(z @ w3 + b3, 0.0)
    recon = jnp.tanh(h2 @ w4 + b4)
    return recon, z


if __name__ == "__main__":
    # Small shapes consistent with the module.
    B, input_dim, mid_dim, features = 8, 32, 64, 16

    key = jax.random.PRNGKey(0)
    kx, kp = jax.random.split(key)
    x = jax.random.normal(kx, (B, input_dim), dtype=jnp.float32)
    params = init_params(kp, input_dim, mid_dim, features)

    recon_ref, z_ref = ae_reference(x, params)

    # f32 MXU path: tight check against the reference.
    recon32, z32 = ae_forward(x, params, compute_dtype=jnp.float32)
    recon32 = jax.block_until_ready(recon32)
    z32 = jax.block_until_ready(z32)
    assert recon32.shape == (B, input_dim) and z32.shape == (B, 2 * features)
    assert jnp.allclose(recon32, recon_ref, atol=1e-5, rtol=1e-5)
    assert jnp.allclose(z32, z_ref, atol=1e-5, rtol=1e-5)

    # bf16-operand path (default): f32 accumulation, looser tolerance.
    recon_bf, z_bf = ae_forward(x, params)
    recon_bf = jax.block_until_ready(recon_bf)
    z_bf = jax.block_until_ready(z_bf)
    assert recon_bf.shape == (B, input_dim) and z_bf.shape == (B, 2 * features)
    assert jnp.allclose(recon_bf, recon_ref, atol=3e-2, rtol=3e-2)
    assert jnp.allclose(z_bf, z_ref, atol=3e-2, rtol=3e-2)

    print("KERNEL_OK")
</pallas_src>

<mosaic_0001>
module attributes {stable_mosaic.version = 11 : i64} {
  func.func @ae_kernel(%arg0: i32, %arg1: memref<8x128xf32, #tpu.memory_space<vmem>>, %arg2: memref<128x128xf32, #tpu.memory_space<vmem>>, %arg3: memref<1x128xf32, #tpu.memory_space<vmem>>, %arg4: memref<128x128xf32, #tpu.memory_space<vmem>>, %arg5: memref<1x128xf32, #tpu.memory_space<vmem>>, %arg6: memref<128x128xf32, #tpu.memory_space<vmem>>, %arg7: memref<1x128xf32, #tpu.memory_space<vmem>>, %arg8: memref<128x128xf32, #tpu.memory_space<vmem>>, %arg9: memref<1x128xf32, #tpu.memory_space<vmem>>, %arg10: memref<8x128xf32, #tpu.memory_space<vmem>>, %arg11: memref<8x128xf32, #tpu.memory_space<vmem>>) attributes {dimension_semantics = [#tpu.dimension_semantics<parallel>], iteration_bounds = array<i64: 1>, scalar_prefetch = 0 : i64, scratch_operands = 0 : i64, tpu.core_type = #tpu.core_type<tc>, window_params = [{transform_indices = @transform_0, window_bounds = array<i64: 8, 128>}, {pipeline_mode = #tpu.pipeline_mode<synchronous>, transform_indices = @transform_1, window_bounds = array<i64: 128, 128>}, {pipeline_mode = #tpu.pipeline_mode<synchronous>, transform_indices = @transform_2, window_bounds = array<i64: 1, 128>}, {pipeline_mode = #tpu.pipeline_mode<synchronous>, transform_indices = @transform_3, window_bounds = array<i64: 128, 128>}, {pipeline_mode = #tpu.pipeline_mode<synchronous>, transform_indices = @transform_4, window_bounds = array<i64: 1, 128>}, {pipeline_mode = #tpu.pipeline_mode<synchronous>, transform_indices = @transform_5, window_bounds = array<i64: 128, 128>}, {pipeline_mode = #tpu.pipeline_mode<synchronous>, transform_indices = @transform_6, window_bounds = array<i64: 1, 128>}, {pipeline_mode = #tpu.pipeline_mode<synchronous>, transform_indices = @transform_7, window_bounds = array<i64: 128, 128>}, {pipeline_mode = #tpu.pipeline_mode<synchronous>, transform_indices = @transform_8, window_bounds = array<i64: 1, 128>}, {transform_indices = @transform_9, window_bounds = array<i64: 8, 128>}, {transform_indices = @transform_10, window_bounds = array<i64: 8, 128>}]} {
    %c0 = arith.constant 0 : index
    %c0_0 = arith.constant 0 : index
    %0 = vector.load %arg1[%c0, %c0_0] : memref<8x128xf32, #tpu.memory_space<vmem>>, vector<8x128xf32>
    %c0_1 = arith.constant 0 : index
    %c0_2 = arith.constant 0 : index
    %1 = vector.load %arg2[%c0_1, %c0_2] : memref<128x128xf32, #tpu.memory_space<vmem>>, vector<128x128xf32>
    %cst = arith.constant dense<0.000000e+00> : vector<8x128xf32>
    %2 = tpu.matmul %0, %1, %cst {dimension_numbers = #tpu.dot_dimension_numbers<[1], [0], [0], [1], [0, 0, 1, 1], [], []>} : vector<8x128xf32>, vector<128x128xf32>, vector<8x128xf32> -> vector<8x128xf32>
    %c0_3 = arith.constant 0 : index
    %c0_4 = arith.constant 0 : index
    %3 = vector.load %arg3[%c0_3, %c0_4] : memref<1x128xf32, #tpu.memory_space<vmem>>, vector<1x128xf32>
    %4 = vector.broadcast %3 : vector<1x128xf32> to vector<8x128xf32>
    %5 = arith.addf %2, %4 : vector<8x128xf32>
    %cst_5 = arith.constant 0.000000e+00 : f32
    %6 = vector.broadcast %cst_5 : f32 to vector<8x128xf32>
    %7 = arith.maximumf %5, %6 : vector<8x128xf32>
    %c0_6 = arith.constant 0 : index
    %c0_7 = arith.constant 0 : index
    %8 = vector.load %arg4[%c0_6, %c0_7] : memref<128x128xf32, #tpu.memory_space<vmem>>, vector<128x128xf32>
    %cst_8 = arith.constant dense<0.000000e+00> : vector<8x128xf32>
    %9 = tpu.matmul %7, %8, %cst_8 {dimension_numbers = #tpu.dot_dimension_numbers<[1], [0], [0], [1], [0, 0, 1, 1], [], []>} : vector<8x128xf32>, vector<128x128xf32>, vector<8x128xf32> -> vector<8x128xf32>
    %c0_9 = arith.constant 0 : index
    %c0_10 = arith.constant 0 : index
    %10 = vector.load %arg5[%c0_9, %c0_10] : memref<1x128xf32, #tpu.memory_space<vmem>>, vector<1x128xf32>
    %11 = vector.broadcast %10 : vector<1x128xf32> to vector<8x128xf32>
    %12 = arith.addf %9, %11 : vector<8x128xf32>
    %c0_11 = arith.constant 0 : index
    %c0_12 = arith.constant 0 : index
    %13 = vector.load %arg11[%c0_11, %c0_12] : memref<8x128xf32, #tpu.memory_space<vmem>>, vector<8x128xf32>
    tpu.vector_store %arg11[%c0_11, %c0_12], %12 {strides = array<i32>} : memref<8x128xf32, #tpu.memory_space<vmem>>, vector<8x128xf32>,
    %c0_13 = arith.constant 0 : index
    %c0_14 = arith.constant 0 : index
    %14 = vector.load %arg6[%c0_13, %c0_14] : memref<128x128xf32, #tpu.memory_space<vmem>>, vector<128x128xf32>
    %cst_15 = arith.constant dense<0.000000e+00> : vector<8x128xf32>
    %15 = tpu.matmul %12, %14, %cst_15 {dimension_numbers = #tpu.dot_dimension_numbers<[1], [0], [0], [1], [0, 0, 1, 1], [], []>} : vector<8x128xf32>, vector<128x128xf32>, vector<8x128xf32> -> vector<8x128xf32>
    %c0_16 = arith.constant 0 : index
    %c0_17 = arith.constant 0 : index
    %16 = vector.load %arg7[%c0_16, %c0_17] : memref<1x128xf32, #tpu.memory_space<vmem>>, vector<1x128xf32>
    %17 = vector.broadcast %16 : vector<1x128xf32> to vector<8x128xf32>
    %18 = arith.addf %15, %17 : vector<8x128xf32>
    %cst_18 = arith.constant 0.000000e+00 : f32
    %19 = vector.broadcast %cst_18 : f32 to vector<8x128xf32>
    %20 = arith.maximumf %18, %19 : vector<8x128xf32>
    %c0_19 = arith.constant 0 : index
    %c0_20 = arith.constant 0 : index
    %21 = vector.load %arg8[%c0_19, %c0_20] : memref<128x128xf32, #tpu.memory_space<vmem>>, vector<128x128xf32>
    %cst_21 = arith.constant dense<0.000000e+00> : vector<8x128xf32>
    %22 = tpu.matmul %20, %21, %cst_21 {dimension_numbers = #tpu.dot_dimension_numbers<[1], [0], [0], [1], [0, 0, 1, 1], [], []>} : vector<8x128xf32>, vector<128x128xf32>, vector<8x128xf32> -> vector<8x128xf32>
    %c0_22 = arith.constant 0 : index
    %c0_23 = arith.constant 0 : index
    %23 = vector.load %arg9[%c0_22, %c0_23] : memref<1x128xf32, #tpu.memory_space<vmem>>, vector<1x128xf32>
    %24 = vector.broadcast %23 : vector<1x128xf32> to vector<8x128xf32>
    %25 = arith.addf %22, %24 : vector<8x128xf32>
    %26 = math.tanh %25 : vector<8x128xf32>
    %c0_24 = arith.constant 0 : index
    %c0_25 = arith.constant 0 : index
    %27 = vector.load %arg10[%c0_24, %c0_25] : memref<8x128xf32, #tpu.memory_space<vmem>>, vector<8x128xf32>
    tpu.vector_store %arg10[%c0_24, %c0_25], %26 {strides = array<i32>} : memref<8x128xf32, #tpu.memory_space<vmem>>, vector<8x128xf32>,
    return
  }
  func.func @transform_0(%arg0: i32) -> (i32, i32) {
    %c0_i32 = arith.constant 0 : i32
    %c0_i32_0 = arith.constant 0 : i32
    return %arg0, %c0_i32 : i32, i32
  }
  func.func @transform_1(%arg0: i32) -> (i32, i32) {
    %c0_i32 = arith.constant 0 : i32
    %c0_i32_0 = arith.constant 0 : i32
    %c0_i32_1 = arith.constant 0 : i32
    return %c0_i32, %c0_i32_0 : i32, i32
  }
  func.func @transform_2(%arg0: i32) -> (i32, i32) {
    %c0_i32 = arith.constant 0 : i32
    %c0_i32_0 = arith.constant 0 : i32
    %c0_i32_1 = arith.constant 0 : i32
    return %c0_i32, %c0_i32_0 : i32, i32
  }
  func.func @transform_3(%arg0: i32) -> (i32, i32) {
    %c0_i32 = arith.constant 0 : i32
    %c0_i32_0 = arith.constant 0 : i32
    %c0_i32_1 = arith.constant 0 : i32
    return %c0_i32, %c0_i32_0 : i32, i32
  }
  func.func @transform_4(%arg0: i32) -> (i32, i32) {
    %c0_i32 = arith.constant 0 : i32
    %c0_i32_0 = arith.constant 0 : i32
    %c0_i32_1 = arith.constant 0 : i32
    return %c0_i32, %c0_i32_0 : i32, i32
  }
  func.func @transform_5(%arg0: i32) -> (i32, i32) {
    %c0_i32 = arith.constant 0 : i32
    %c0_i32_0 = arith.constant 0 : i32
    %c0_i32_1 = arith.constant 0 : i32
    return %c0_i32, %c0_i32_0 : i32, i32
  }
  func.func @transform_6(%arg0: i32) -> (i32, i32) {
    %c0_i32 = arith.constant 0 : i32
    %c0_i32_0 = arith.constant 0 : i32
    %c0_i32_1 = arith.constant 0 : i32
    return %c0_i32, %c0_i32_0 : i32, i32
  }
  func.func @transform_7(%arg0: i32) -> (i32, i32) {
    %c0_i32 = arith.constant 0 : i32
    %c0_i32_0 = arith.constant 0 : i32
    %c0_i32_1 = arith.constant 0 : i32
    return %c0_i32, %c0_i32_0 : i32, i32
  }
  func.func @transform_8(%arg0: i32) -> (i32, i32) {
    %c0_i32 = arith.constant 0 : i32
    %c0_i32_0 = arith.constant 0 : i32
    %c0_i32_1 = arith.constant 0 : i32
    return %c0_i32, %c0_i32_0 : i32, i32
  }
  func.func @transform_9(%arg0: i32) -> (i32, i32) {
    %c0_i32 = arith.constant 0 : i32
    %c0_i32_0 = arith.constant 0 : i32
    return %arg0, %c0_i32 : i32, i32
  }
  func.func @transform_10(%arg0: i32) -> (i32, i32) {
    %c0_i32 = arith.constant 0 : i32
    %c0_i32_0 = arith.constant 0 : i32
    return %arg0, %c0_i32 : i32, i32
  }
}

</mosaic_0001>

<bundles_post_ra>
// kernel: ae_forward.1
= control target key start
LH: loop header
LB: loop body
LE: loop exit
PB: predicated region body
PF: predicated region fallthrough
CT: control target
= control target key end

     0   :  { %16 = vsyncpa [#allocation3], 0  ;;  %v805_v3 = vmov 0.0|0.0   ;;  %vm806_vm0 = vmmov 0   ;;  %v807_v6 = vmov 0.0   ;;  %s1136_s0 = inlined_call_operand.vmem [shape: f32[8,128], index: 0, kind: input, shape index: {}]   ;;  %s1137_s1 = inlined_call_operand.vmem [shape: f32[128,128], index: 1, kind: input, shape index: {}]   ;;  %s1138_s2 = inlined_call_operand.vmem [shape: f32[1,128], index: 2, kind: input, shape index: {}]   ;;  %s1139_s3 = inlined_call_operand.vmem [shape: f32[128,128], index: 3, kind: input, shape index: {}]   ;;  %s1140_s4 = inlined_call_operand.vmem [shape: f32[1,128], index: 4, kind: input, shape index: {}]   ;;  %s1141_s5 = inlined_call_operand.vmem [shape: f32[128,128], index: 5, kind: input, shape index: {}]   ;;  %s1142_s6 = inlined_call_operand.vmem [shape: f32[1,128], index: 6, kind: input, shape index: {}]   ;;  %s1143_s7 = inlined_call_operand.vmem [shape: f32[128,128], index: 7, kind: input, shape index: {}]   ;;  %s1144_s8 = inlined_call_operand.vmem [shape: f32[1,128], index: 8, kind: input, shape index: {}]   ;;  %s1145_s9 = inlined_call_operand.hbm [shape: f32[8,128], index: 9, kind: output, shape index: {0}]   ;;  %s1146_s10 = inlined_call_operand.hbm [shape: f32[8,128], index: 10, kind: output, shape index: {1}]  }
   0x1   :  { %v37_v0 = vld [vmem:[%s1137_s1] sm:$0xff]  ;;  %v38_v1 = vld [vmem:[%s1137_s1 + $0x8] sm:$0xff]  ;;  %v39_v2 = vld [vmem:[%s1137_s1 + $0x10] sm:$0xff]  ;;  %654 = vmatprep.subr.bf16.mxu0 %v805_v3  ;;  %546 = vmatprep.mubr.msk.f32.mxu0 %vm806_vm0, %v807_v6 }
   0x2   :  { %v655_v4 = vpack.c.bf16 %v38_v1, %v37_v0  ;;  %v40_v5 = vld [vmem:[%s1137_s1 + $0x18] sm:$0xff]  ;;  %678 = vmatprep.subr.bf16.mxu1 %v805_v3  ;;  %581 = vmatprep.mubr.msk.f32.mxu1 %vm806_vm0, %v807_v6  ;;  %v41_v8 = vld [vmem:[%s1137_s1 + $0x20] sm:$0xff]  ;;  %v42_v9 = vld [vmem:[%s1137_s1 + $0x28] sm:$0xff] }
   0x3   :  { %v658_v7 = vpack.c.bf16 %v40_v5, %v39_v2  ;;  %v131_v10 = vld [vmem:[%s1139_s3] sm:$0xff]  ;;  %v132_v11 = vld [vmem:[%s1139_s3 + $0x8] sm:$0xff]  ;;  %v133_v12 = vld [vmem:[%s1139_s3 + $0x10] sm:$0xff]  ;;  %v661_v14 = vpack.c.bf16 %v42_v9, %v41_v8 }
   0x4   :  { %656 = vmatpush3.bf16.msra.mxu0 %v655_v4  ;;  %v134_v13 = vld [vmem:[%s1139_s3 + $0x18] sm:$0xff]  ;;  %v679_v15 = vpack.c.bf16 %v132_v11, %v131_v10  ;;  %v43_v16 = vld [vmem:[%s1137_s1 + $0x30] sm:$0xff]  ;;  %v135_v19 = vld [vmem:[%s1139_s3 + $0x20] sm:$0xff] }
   0x5   :  { %657 = vmatprep.subr.bf16.mxu0 %v805_v3  ;;  %v44_v17 = vld [vmem:[%s1137_s1 + $0x38] sm:$0xff]  ;;  %v682_v18 = vpack.c.bf16 %v134_v13, %v133_v12  ;;  %v136_v20 = vld [vmem:[%s1139_s3 + $0x28] sm:$0xff] }
   0x6   :  { %680 = vmatpush3.bf16.msra.mxu1 %v679_v15 }
   0x7   :  { %681 = vmatprep.subr.bf16.mxu1 %v805_v3 }
   0x8   :  { %659 = vmatpush3.bf16.msra.mxu0 %v658_v7 }
   0x9   :  { %660 = vmatprep.subr.bf16.mxu0 %v805_v3 }
   0xa   :  { %17 = vsyncpa [#allocation5], 0  ;;  %v664_v21 = vpack.c.bf16 %v44_v17, %v43_v16  ;;  %v45_v22 = vld [vmem:[%s1137_s1 + $0x40] sm:$0xff]  ;;  %v46_v23 = vld [vmem:[%s1137_s1 + $0x48] sm:$0xff]  ;;  %683 = vmatpush3.bf16.msra.mxu1 %v682_v18  ;;  %v685_v24 = vpack.c.bf16 %v136_v20, %v135_v19 }
   0xb   :  { %684 = vmatprep.subr.bf16.mxu1 %v805_v3  ;;  %v137_v25 = vld [vmem:[%s1139_s3 + $0x30] sm:$0xff]  ;;  %v138_v26 = vld [vmem:[%s1139_s3 + $0x38] sm:$0xff]  ;;  %v667_v27 = vpack.c.bf16 %v46_v23, %v45_v22  ;;  %v139_v31 = vld [vmem:[%s1139_s3 + $0x40] sm:$0xff] }
   0xc   :  { %662 = vmatpush3.bf16.msra.mxu0 %v661_v14  ;;  %v47_v28 = vld [vmem:[%s1137_s1 + $0x50] sm:$0xff]  ;;  %v48_v29 = vld [vmem:[%s1137_s1 + $0x58] sm:$0xff]  ;;  %v688_v30 = vpack.c.bf16 %v138_v26, %v137_v25  ;;  %v140_v32 = vld [vmem:[%s1139_s3 + $0x48] sm:$0xff] }
   0xd   :  { %663 = vmatprep.subr.bf16.mxu0 %v805_v3  ;;  %v670_v33 = vpack.c.bf16 %v48_v29, %v47_v28  ;;  %v49_v34 = vld [vmem:[%s1137_s1 + $0x60] sm:$0xff]  ;;  %v50_v35 = vld [vmem:[%s1137_s1 + $0x68] sm:$0xff]  ;;  %v691_v36 = vpack.c.bf16 %v140_v32, %v139_v31  ;;  %v141_v37 = vld [vmem:[%s1139_s3 + $0x50] sm:$0xff] }
   0xe   :  { %686 = vmatpush3.bf16.msra.mxu1 %v685_v24  ;;  %v142_v38 = vld [vmem:[%s1139_s3 + $0x58] sm:$0xff]  ;;  %v673_v39 = vpack.c.bf16 %v50_v35, %v49_v34  ;;  %v51_v40 = vld [vmem:[%s1137_s1 + $0x70] sm:$0xff]  ;;  %v143_v43 = vld [vmem:[%s1139_s3 + $0x60] sm:$0xff] }
   0xf   :  { %687 = vmatprep.subr.bf16.mxu1 %v805_v3  ;;  %v52_v41 = vld [vmem:[%s1137_s1 + $0x78] sm:$0xff]  ;;  %v694_v42 = vpack.c.bf16 %v142_v38, %v141_v37  ;;  %v144_v44 = vld [vmem:[%s1139_s3 + $0x68] sm:$0xff]  ;;  %v36_v47 = vld [vmem:[%s1136_s0] sm:$0xff] }
  0x10   :  { %665 = vmatpush3.bf16.msra.mxu0 %v664_v21  ;;  %v676_v45 = vpack.c.bf16 %v52_v41, %v51_v40  ;;  %v697_v46 = vpack.c.bf16 %v144_v44, %v143_v43  ;;  %v145_v48 = vld [vmem:[%s1139_s3 + $0x70] sm:$0xff]  ;;  %v146_v49 = vld [vmem:[%s1139_s3 + $0x78] sm:$0xff]  ;;  %v225_v51 = vld [vmem:[%s1141_s5] sm:$0xff] }
  0x11   :  { %666 = vmatprep.subr.bf16.mxu0 %v805_v3  ;;  %v700_v50 = vpack.c.bf16 %v146_v49, %v145_v48  ;;  %v226_v52 = vld [vmem:[%s1141_s5 + $0x8] sm:$0xff]  ;;  %v227_v53 = vld [vmem:[%s1141_s5 + $0x10] sm:$0xff]  ;;  %v228_v55 = vld [vmem:[%s1141_s5 + $0x18] sm:$0xff] }
  0x12   :  { %689 = vmatpush3.bf16.msra.mxu1 %v688_v30  ;;  %v703_v54 = vpack.c.bf16 %v226_v52, %v225_v51  ;;  %v706_v56 = vpack.c.bf16 %v228_v55, %v227_v53  ;;  %v229_v57 = vld [vmem:[%s1141_s5 + $0x20] sm:$0xff]  ;;  %v230_v58 = vld [vmem:[%s1141_s5 + $0x28] sm:$0xff]  ;;  %v231_v60 = vld [vmem:[%s1141_s5 + $0x30] sm:$0xff] }
  0x13   :  { %690 = vmatprep.subr.bf16.mxu1 %v805_v3  ;;  %v709_v59 = vpack.c.bf16 %v230_v58, %v229_v57  ;;  %v232_v61 = vld [vmem:[%s1141_s5 + $0x38] sm:$0xff]  ;;  %v233_v63 = vld [vmem:[%s1141_s5 + $0x40] sm:$0xff]  ;;  %v234_v0 = vld [vmem:[%s1141_s5 + $0x48] sm:$0xff] }
  0x14   :  { %668 = vmatpush3.bf16.msra.mxu0 %v667_v27  ;;  %v712_v62 = vpack.c.bf16 %v232_v61, %v231_v60  ;;  %v715_v1 = vpack.c.bf16 %v234_v0, %v233_v63  ;;  %v235_v2 = vld [vmem:[%s1141_s5 + $0x50] sm:$0xff]  ;;  %v236_v4 = vld [vmem:[%s1141_s5 + $0x58] sm:$0xff]  ;;  %v237_v7 = vld [vmem:[%s1141_s5 + $0x60] sm:$0xff] }
  0x15   :  { %669 = vmatprep.subr.bf16.mxu0 %v805_v3  ;;  %v718_v5 = vpack.c.bf16 %v236_v4, %v235_v2  ;;  %v238_v8 = vld [vmem:[%s1141_s5 + $0x68] sm:$0xff]  ;;  %v442_v10 = vld [vmem:[%s1138_s2] ss:$0 sm:$0xff]  ;;  %v239_v15 = vld [vmem:[%s1141_s5 + $0x70] sm:$0xff] }
  0x16   :  { %692 = vmatpush3.bf16.msra.mxu1 %v691_v36  ;;  %v721_v9 = vpack.c.bf16 %v238_v8, %v237_v7  ;;  %v240_v16 = vld [vmem:[%s1141_s5 + $0x78] sm:$0xff]  ;;  %v319_v18 = vld [vmem:[%s1143_s7] sm:$0xff]  ;;  %v320_v19 = vld [vmem:[%s1143_s7 + $0x8] sm:$0xff] }
  0x17   :  { %693 = vmatprep.subr.bf16.mxu1 %v805_v3  ;;  %v724_v17 = vpack.c.bf16 %v240_v16, %v239_v15  ;;  %v727_v20 = vpack.c.bf16 %v320_v19, %v319_v18  ;;  %v322_v21 = vld [vmem:[%s1143_s7 + $0x18] sm:$0xff]  ;;  %v323_v23 = vld [vmem:[%s1143_s7 + $0x20] sm:$0xff]  ;;  %v324_v24 = vld [vmem:[%s1143_s7 + $0x28] sm:$0xff] }
  0x18   :  { %671 = vmatpush3.bf16.msra.mxu0 %v670_v33  ;;  %v733_v25 = vpack.c.bf16 %v324_v24, %v323_v23  ;;  %v325_v26 = vld [vmem:[%s1143_s7 + $0x30] sm:$0xff]  ;;  %v326_v27 = vld [vmem:[%s1143_s7 + $0x38] sm:$0xff]  ;;  %v327_v29 = vld [vmem:[%s1143_s7 + $0x40] sm:$0xff] }
  0x19   :  { %672 = vmatprep.subr.bf16.mxu0 %v805_v3  ;;  %v736_v28 = vpack.c.bf16 %v326_v27, %v325_v26  ;;  %v328_v30 = vld [vmem:[%s1143_s7 + $0x48] sm:$0xff]  ;;  %v329_v32 = vld [vmem:[%s1143_s7 + $0x50] sm:$0xff]  ;;  %v330_v33 = vld [vmem:[%s1143_s7 + $0x58] sm:$0xff] }
  0x1a   :  { %695 = vmatpush3.bf16.msra.mxu1 %v694_v42  ;;  %v739_v31 = vpack.c.bf16 %v328_v30, %v327_v29  ;;  %v742_v34 = vpack.c.bf16 %v330_v33, %v329_v32  ;;  %v331_v35 = vld [vmem:[%s1143_s7 + $0x60] sm:$0xff]  ;;  %v332_v36 = vld [vmem:[%s1143_s7 + $0x68] sm:$0xff]  ;;  %v333_v42 = vld [vmem:[%s1143_s7 + $0x70] sm:$0xff] }
  0x1b   :  { %696 = vmatprep.subr.bf16.mxu1 %v805_v3  ;;  %v745_v37 = vpack.c.bf16 %v332_v36, %v331_v35  ;;  %v443_v38 = vld [vmem:[%s1140_s4] ss:$0 sm:$0xff]  ;;  %v334_v43 = vld [vmem:[%s1143_s7 + $0x78] sm:$0xff]  ;;  %s808_s4 = smov [#allocation4]  }
  0x1c   :  { %674 = vmatpush3.bf16.msra.mxu0 %v673_v39  ;;  %v748_v44 = vpack.c.bf16 %v334_v43, %v333_v42  ;;  %s430_s15 = sshll.u32 %s808_s4, 4  ;;  %s431_s15 = int_to_ptr.vmem [resolvable:$true] %s430_s15 }
  0x1d   :  { %675 = vmatprep.subr.bf16.mxu0 %v805_v3  ;;  %s757_s16 = scalar_lea.vmem %s431_s15, 128  ;;  %p762_p1 = scmp.lt.s32.totalorder %s431_s15, %s431_s15 }
  0x1e   :  { %698 = vmatpush3.bf16.msra.mxu1 %v697_v46  ;;  %p758_p0 = scmp.ne.s32.totalorder %s431_s15, %s757_s16  ;;  %p763_p2 = scmp.lt.s32.totalorder %s757_s16, %s757_s16 }
  0x1f   :  { %699 = vmatprep.subr.bf16.mxu1 %v805_v3 }
  0x20   :  { %677 = vmatpush3.bf16.msra.mxu0 %v676_v45  ;;  %p764_p3 = por %p763_p2, %p762_p1 }
  0x21   :  { %702 = vmatprep.subr.bf16.mxu0 %v805_v3 }
  0x22   :  { %701 = vmatpush3.bf16.msra.mxu1 %v700_v50  ;;  %p765_p4 = pnand %p764_p3, %p758_p0 }
  0x23   :  { %547 = vmatmul.mubr.f32.vlgmr.msra.gmra.mrb[0].mxu0 %v36_v47  ;;  %726 = vmatprep.subr.bf16.mxu1 %v805_v3 }
  0x24   :  { %616 = vmatprep.mubr.msk.f32.mxu0 %vm806_vm0, %v807_v6  ;;  %704 = vmatpush3.bf16.msra.mxu0 %v703_v54 }
  0x25   :  { %705 = vmatprep.subr.bf16.mxu0 %v805_v3 }
  0x28   :  { %707 = vmatpush3.bf16.msra.mxu0 %v706_v56 }
  0x29   :  { %708 = vmatprep.subr.bf16.mxu0 %v805_v3 }
  0x2c   :  { %710 = vmatpush3.bf16.msra.mxu0 %v709_v59 }
  0x2d   :  { %711 = vmatprep.subr.bf16.mxu0 %v805_v3 }
  0x30   :  { %713 = vmatpush3.bf16.msra.mxu0 %v712_v62 }
  0x31   :  { %714 = vmatprep.subr.bf16.mxu0 %v805_v3 }
  0x34   :  { %716 = vmatpush3.bf16.msra.mxu0 %v715_v1 }
  0x35   :  { %717 = vmatprep.subr.bf16.mxu0 %v805_v3 }
  0x38   :  { %719 = vmatpush3.bf16.msra.mxu0 %v718_v5 }
  0x39   :  { %720 = vmatprep.subr.bf16.mxu0 %v805_v3 }
  0x3c   :  { %722 = vmatpush3.bf16.msra.mxu0 %v721_v9 }
  0x3d   :  { %723 = vmatprep.subr.bf16.mxu0 %v805_v3 }
  0x40   :  { %725 = vmatpush3.bf16.msra.mxu0 %v724_v17 }
  0xf6   :  { %v126_v11 = vpop.f32.mrb[0].mxu0 }
  0xf7   :  { %v127_v12 = vadd.f32 %v442_v10, %v126_v11  ;;  %v548_v13 = vpop.f32.mrb[1].mxu0 }
  0xf9   :  { %v130_v14 = vmax.f32 %v127_v12, 0.0 }
  0xfb   :  { %582 = vmatmul.mubr.f32.vlgmr.msra.gmra.mrb[0].mxu1 %v130_v14 }
  0xfc   :  { %651 = vmatprep.mubr.msk.f32.mxu1 %vm806_vm0, %v807_v6  ;;  %v321_v6 = vld [vmem:[%s1143_s7 + $0x10] sm:$0xff]  ;;  %728 = vmatpush3.bf16.msra.mxu1 %v727_v20 }
  0xfd   :  { %v730_v22 = vpack.c.bf16 %v322_v21, %v321_v6  ;;  %729 = vmatprep.subr.bf16.mxu1 %v805_v3 }
 0x100   :  { %731 = vmatpush3.bf16.msra.mxu1 %v730_v22 }
 0x101   :  { %732 = vmatprep.subr.bf16.mxu1 %v805_v3 }
 0x104   :  { %734 = vmatpush3.bf16.msra.mxu1 %v733_v25 }
 0x105   :  { %735 = vmatprep.subr.bf16.mxu1 %v805_v3 }
 0x108   :  { %737 = vmatpush3.bf16.msra.mxu1 %v736_v28 }
 0x109   :  { %738 = vmatprep.subr.bf16.mxu1 %v805_v3 }
 0x10c   :  { %740 = vmatpush3.bf16.msra.mxu1 %v739_v31 }
 0x10d   :  { %741 = vmatprep.subr.bf16.mxu1 %v805_v3 }
 0x110   :  { %743 = vmatpush3.bf16.msra.mxu1 %v742_v34 }
 0x111   :  { %744 = vmatprep.subr.bf16.mxu1 %v805_v3 }
 0x114   :  { %746 = vmatpush3.bf16.msra.mxu1 %v745_v37 }
 0x115   :  { %747 = vmatprep.subr.bf16.mxu1 %v805_v3  ;;  %v444_v3 = vld [vmem:[%s1142_s6] ss:$0 sm:$0xff] }
 0x118   :  { %749 = vmatpush3.bf16.msra.mxu1 %v748_v44 }
 0x1ce   :  { %v220_v39 = vpop.f32.mrb[0].mxu1 }
 0x1cf   :  { %v221_v40 = vadd.f32 %v443_v38, %v220_v39  ;;  %v583_v41 = vpop.f32.mrb[1].mxu1 }
 0x1d1   :  { %224 = vst [vmem:[#allocation4] sm:$0xff] %v221_v40  ;;  %617 = vmatmul.mubr.f32.vlgmr.msra.gmra.mrb[2].mxu0 %v221_v40 }
 0x2a4   :  { %v314_v45 = vpop.f32.mrb[2].mxu0 }
 0x2a5   :  { %v315_v46 = vadd.f32 %v444_v3, %v314_v45  ;;  %v618_v47 = vpop.f32.mrb[3].mxu0 }
 0x2a7   :  { %v318_v48 = vmax.f32 %v315_v46, 0.0 }
 0x2a9   :  { %652 = vmatmul.mubr.f32.vlgmr.msra.gmra.mrb[2].mxu1 %v318_v48 }
 0x2aa   :  { %768 = shalt.err (!%p765_p4)
}
 0x2ab   :  { %s769_s0 = scalar_lea.hbm %s1146_s10, 128 }
 0x2ac   :  { %p770_p5 = scmp.ne.s32.totalorder %s1146_s10, %s769_s0  ;;  %p773_p6 = scmp.lt.u32.totalorder %s769_s0, %s1146_s10 }
 0x2ae   :  { %p775_p7 = pnand %p773_p6, %p770_p5 }
 0x2b0   :  { %778 = shalt.err (!%p775_p7)
}
 0x2b1   :  { %433 = dma.vmem_to_hbm [thread:$0]  %s431_s15, 128, %s1146_s10, [#allocation5]   ;;  %v445_v49 = vld [vmem:[%s1144_s8] ss:$0 sm:$0xff] }
 0x2b2   :  { %s809_s3 = smov [#allocation2]  }
 0x2b3   :  { %s420_s25 = sshll.u32 %s809_s3, 4  ;;  %s421_s25 = int_to_ptr.vmem [resolvable:$true] %s420_s25 }
 0x2b4   :  { %s779_s26 = scalar_lea.vmem %s421_s25, 128  ;;  %p784_p9 = scmp.lt.s32.totalorder %s421_s25, %s421_s25 }
 0x2b5   :  { %p780_p8 = scmp.ne.s32.totalorder %s421_s25, %s779_s26  ;;  %p785_p10 = scmp.lt.s32.totalorder %s779_s26, %s779_s26 }
 0x2b7   :  { %p786_p11 = por %p785_p10, %p784_p9 }
 0x2b9   :  { %p787_p12 = pnand %p786_p11, %p780_p8 }
 0x37c   :  { %v408_v50 = vpop.f32.mrb[2].mxu1 }
 0x37d   :  { %v409_v51 = vadd.f32 %v445_v49, %v408_v50  ;;  %v653_v52 = vpop.f32.mrb[3].mxu1 }
 0x37f   :  { %755 = vtanh.f32 %v409_v51 }
 0x389   :  { %v756_v53 = vpop.eup %755 }
 0x38a   :  { %413 = vst [vmem:[#allocation2] sm:$0xff] %v756_v53 }
 0x38b   :  { %790 = shalt.err (!%p787_p12)
}
 0x38c   :  { %s791_s8 = scalar_lea.hbm %s1145_s9, 128 }
 0x38d   :  { %p792_p13 = scmp.ne.s32.totalorder %s1145_s9, %s791_s8  ;;  %p795_p0 = scmp.lt.u32.totalorder %s791_s8, %s1145_s9 }
 0x38f   :  { %p797_p1 = pnand %p795_p0, %p792_p13 }
 0x391   :  { %800 = shalt.err (!%p797_p1)
}
 0x392   :  { %423 = dma.vmem_to_hbm [thread:$0]  %s421_s25, 128, %s1145_s9, [#allocation3]  }
 0x393   :  { %801 = dma.done.wait [#allocation3], 128  }
 0x394   :  { %802 = vsyncadd [#allocation3], 4294967168 }
 0x395   :  { %803 = dma.done.wait [#allocation5], 128  }
 0x396   :  { %804 = vsyncadd [#allocation5], 4294967168 }
 0x397   :  { %440 = vsyncpa [#allocation3], 1 }
 0x398   :  { %441 = vsyncpa [#allocation5], 1 }

</bundles_post_ra>
